<compile_context>
chip_gen: v6e
topology: v6e:2x2x1
jax: 0.10.0
libtpu: 0.0.40
codegen_flags: <defaults>
</compile_context>

<pallas_src>
import functools

import jax
import jax.numpy as jnp
from jax.scipy import linalg as jsl
from jax.experimental import pallas as pl
from jax.experimental.pallas import tpu as pltpu

_LOG2 = 0.6931471805599453


def _round_up(x, m):
    return ((x + m - 1) // m) * m


def _safe_chol(A):
    # TODO(synk): psd_safe_cholesky retries with growing jitter on failure;
    #             here we add one tiny fixed relative jitter.
    m = A.shape[-1]
    jitter = 1e-6 * (jnp.trace(A) / m)
    return jnp.linalg.cholesky(A + jitter * jnp.eye(m, dtype=A.dtype))


# ----------------------------------------------------------------------------
# Pallas kernel: per-N-tile data terms of the ELBO, accumulated to a scalar.
# ----------------------------------------------------------------------------
def _elbo_kernel(knm_ref, rhs_ref, aux_ref, out_ref, acc_ref, *, mpad):
    n = pl.program_id(1)

    @pl.when(n == 0)
    def _init():
        acc_ref[...] = jnp.zeros_like(acc_ref)

    knm = knm_ref[...]                                        # (TN, Mpad)

    # Single fused MXU pass: columns = [kappa | kappa@Sigma | kappa@mu, 0...]
    prod = jnp.dot(knm, rhs_ref[...], preferred_element_type=jnp.float32)
    kappa = prod[:, :mpad]                                    # (TN, Mpad)
    kappa_sigma = prod[:, mpad:2 * mpad]                      # (TN, Mpad)
    kappa_mu = jnp.sum(prod[:, 2 * mpad:], axis=1, keepdims=True)  # (TN, 1)

    knn_d = aux_ref[:, 0:1]                                   # diag(Knn)
    y = aux_ref[:, 1:2]                                       # targets
    c = aux_ref[:, 2:3]                                       # c buffer rows

    # theta = tanh(c/2) / (2c), guarded at c -> 0 (limit 1/4); divide on EUP.
    abs_c = jnp.abs(c)
    small = abs_c < 1e-12
    safe_c = jnp.where(small, 1.0, c)
    theta = jnp.where(
        small, 0.25,
        0.5 * jnp.tanh(0.5 * c) * pl.reciprocal(safe_c, approx=True))

    # stable log(cosh(c/2)) = |c|/2 + log(1 + exp(-|c|)) - log 2
    log_cosh_half = 0.5 * abs_c + jnp.log(1.0 + jnp.exp(-abs_c)) - _LOG2

    # Merged row reduction: K_tilde - kSk = knn_diag - sum((Knm + kS)*kappa)
    row_red = jnp.sum((knm + kappa_sigma) * kappa, axis=1, keepdims=True)

    contrib = (y * kappa_mu
               - theta * (knn_d - row_red - kappa_mu * kappa_mu - c * c)
               - 2.0 * log_cosh_half)                         # (TN, 1)
    acc_ref[...] += jnp.sum(contrib, axis=0, keepdims=True)   # (1, 1)

    @pl.when(n == pl.num_programs(1) - 1)
    def _finalize():
        out_ref[...] = jnp.broadcast_to(acc_ref[...], out_ref.shape)


# ----------------------------------------------------------------------------
# Wrapper: glue (small Cholesky / solves), packing, pallas_call, assembly.
# ----------------------------------------------------------------------------
def elbo_pallas(K, Y, batch_idx, c_buf, eta, H, num_inducing_points,
                *, tile_rows=256, num_splits=2):
    M = int(num_inducing_points)
    N = int(Y.shape[0])
    dt = jnp.float32
    eye_m = jnp.eye(M, dtype=dt)

    K = K.astype(dt)
    Y = Y.astype(dt)
    c_buf = c_buf.astype(dt)
    eta = eta.astype(dt)
    H = H.astype(dt)

    # ---- NaturalToMuSigma (host-side glue) ----
    L_inv = _safe_chol(-2.0 * H)                         # chol(-2H), lower
    Ls = jsl.solve_triangular(L_inv, eye_m, lower=True)  # _triangular_inverse
    Sigma = Ls.T @ Ls
    mu = Sigma @ eta

    # ---- kernel-matrix pieces + Cholesky of Kmm (glue) ----
    c = c_buf[batch_idx]                                 # (N,)
    Kmm = K[:M, :M]
    Knm = K[:M, M:].T                                    # (N, M)
    knn_diag = jnp.diag(K[M:, M:])                       # (N,)
    L = _safe_chol(Kmm)
    Kmm_inv = jsl.cho_solve((L, True), eye_m)

    # ---- N-independent scalar terms: O(M^2), added exactly once ----
    logdet_sigma = -2.0 * jnp.sum(jnp.log(jnp.diag(L_inv)))
    logdet_kmm = 2.0 * jnp.sum(jnp.log(jnp.diag(L)))
    trace_term = jnp.sum(Kmm_inv * Sigma)                # trace(Kmm^-1 Sigma)
    mu_kinv_mu = mu @ (Kmm_inv @ mu)
    const_terms = logdet_sigma - logdet_kmm - trace_term - mu_kinv_mu

    # ---- pad & pack operands ----
    m_pad = _round_up(M, 128)
    w = 2 * m_pad + 128                                  # fused RHS width

    rhs = jnp.zeros((m_pad, w), dtype=dt)
    rhs = rhs.at[:M, :M].set(Kmm_inv)
    rhs = rhs.at[:M, m_pad:m_pad + M].set(Kmm_inv @ Sigma)
    rhs = rhs.at[:M, 2 * m_pad].set(Kmm_inv @ mu)

    rows_per_split = _round_up(max(1, -(-N // num_splits)), 8)
    tn = min(tile_rows, rows_per_split)
    rows_per_split = _round_up(rows_per_split, tn)
    tiles_per_split = rows_per_split // tn
    n_pad = num_splits * rows_per_split

    knm_p = jnp.zeros((n_pad, m_pad), dtype=dt).at[:N, :M].set(Knm)

    aux = jnp.zeros((n_pad, 8), dtype=dt)                # [knn_diag, Y, c, 0..]
    aux = aux.at[:N, 0].set(knn_diag)
    aux = aux.at[:N, 1].set(Y)
    aux = aux.at[:N, 2].set(c)

    kernel = functools.partial(_elbo_kernel, mpad=m_pad)

    out = pl.pallas_call(
        kernel,
        out_shape=jax.ShapeDtypeStruct((num_splits * 8, 128), dt),
        grid=(num_splits, tiles_per_split),
        in_specs=[
            pl.BlockSpec((tn, m_pad),
                         lambda p, n: (p * tiles_per_split + n, 0)),
            pl.BlockSpec((m_pad, w), lambda p, n: (0, 0)),      # resident RHS
            pl.BlockSpec((tn, 8),
                         lambda p, n: (p * tiles_per_split + n, 0)),
        ],
        out_specs=pl.BlockSpec((8, 128), lambda p, n: (p, 0)),
        scratch_shapes=[pltpu.VMEM((1, 1), jnp.float32)],
        compiler_params=pltpu.CompilerParams(
            dimension_semantics=("parallel", "arbitrary"),
            vmem_limit_bytes=48 * 1024 * 1024),
    )(knm_p, rhs, aux)

    data_sum = jnp.sum(out[::8, 0])                      # one partial per split
    return 0.5 * (const_terms + data_sum)


# ----------------------------------------------------------------------------
# Pure-JAX reference (mirrors the PyTorch forward) for verification.
# ----------------------------------------------------------------------------
def elbo_reference(K, Y, batch_idx, c_buf, eta, H, num_inducing_points):
    M = num_inducing_points
    eye_m = jnp.eye(M, dtype=K.dtype)
    L_inv = _safe_chol(-2.0 * H)
    Ls = jsl.solve_triangular(L_inv, eye_m, lower=True)
    Sigma = Ls.T @ Ls
    mu = Sigma @ eta
    c = c_buf[batch_idx]
    Kmm = K[:M, :M]
    Knm = K[:M, M:].T
    Knn = K[M:, M:]
    L = _safe_chol(Kmm)
    kappa = jsl.cho_solve((L, True), Knm.T).T
    theta = (1.0 / (2.0 * c)) * jnp.tanh(c / 2.0)
    logDetSigma = jnp.linalg.slogdet(Sigma)[1]
    logDetKmm = jnp.linalg.slogdet(Kmm)[1]
    TraceKmmInvSigma = jnp.trace(jsl.cho_solve((L, True), Sigma))
    MuKmmInvMu = mu @ jsl.cho_solve((L, True), mu[:, None])[:, 0]
    YKappaMu = Y @ (kappa @ mu)
    K_tilde = jnp.diag(Knn - Knm @ kappa.T)
    kSk = jnp.diag(kappa @ (Sigma @ kappa.T))
    kappaMu = kappa @ mu
    theta_sum = theta @ (K_tilde - kSk - kappaMu ** 2 - c ** 2)
    logCosc = 2.0 * jnp.sum(jnp.log(jnp.cosh(c / 2.0)))
    return 0.5 * (logDetSigma - logDetKmm - TraceKmmInvSigma - MuKmmInvMu
                  + YKappaMu - theta_sum - logCosc)


if __name__ == "__main__":
    # Small deterministic problem
    num_data = 32
    M = 8                    # num_inducing_points
    N = 16                   # minibatch size
    dt = jnp.float32

    key = jax.random.PRNGKey(0)
    k1, k2, k3 = jax.random.split(key, 3)

    # Full kernel matrix over [inducing ; batch] points: PSD by construction.
    A = jax.random.normal(k1, (M + N, M + N), dtype=dt)
    K = A @ A.T + 2.0 * jnp.eye(M + N, dtype=dt)

    # Targets and indices of the minibatch into the c-buffer.
    Y = jnp.sign(jax.random.normal(k2, (N,), dtype=dt))
    batch_idx = jax.random.permutation(k3, num_data)[:N]

    # Buffers exactly as in VariationalELBO.__init__ (deterministic init).
    c_buf = jnp.ones((num_data,), dtype=dt)              # self.c
    eta = jnp.zeros((M,), dtype=dt)                      # self.eta
    H = -0.5 * jnp.eye(M, dtype=dt)                      # self.H

    out = elbo_pallas(K, Y, batch_idx, c_buf, eta, H, M)
    out = jax.block_until_ready(out)

    ref = elbo_reference(K, Y, batch_idx, c_buf, eta, H, M)
    ref = jax.block_until_ready(ref)

    assert jnp.isfinite(out), "kernel produced non-finite ELBO"
    assert abs(float(out) - float(ref)) <= 2e-3 * (1.0 + abs(float(ref))), \
        f"mismatch: pallas={float(out)} ref={float(ref)}"

    print("KERNEL_OK")
</pallas_src>

<mosaic_0001>
module attributes {stable_mosaic.version = 11 : i64} {
  func.func @_elbo_kernel(%arg0: i32, %arg1: i32, %arg2: memref<8x128xf32, #tpu.memory_space<vmem>>, %arg3: memref<128x384xf32, #tpu.memory_space<vmem>>, %arg4: memref<8x8xf32, #tpu.memory_space<vmem>>, %arg5: memref<8x128xf32, #tpu.memory_space<vmem>>, %arg6: memref<1x1xf32, #tpu.memory_space<vmem>>) attributes {dimension_semantics = [#tpu.dimension_semantics<parallel>, #tpu.dimension_semantics<arbitrary>], iteration_bounds = array<i64: 2, 1>, scalar_prefetch = 0 : i64, scratch_operands = 1 : i64, tpu.core_type = #tpu.core_type<tc>, window_params = [{transform_indices = @transform_0, window_bounds = array<i64: 8, 128>}, {pipeline_mode = #tpu.pipeline_mode<synchronous>, transform_indices = @transform_1, window_bounds = array<i64: 128, 384>}, {transform_indices = @transform_2, window_bounds = array<i64: 8, 8>}, {transform_indices = @transform_3, window_bounds = array<i64: 8, 128>}]} {
    %c0_i32 = arith.constant 0 : i32
    %0 = arith.cmpi eq, %arg1, %c0_i32 : i32
    %1 = arith.extui %0 : i1 to i32
    %c0_i32_0 = arith.constant 0 : i32
    %2 = arith.cmpi ne, %1, %c0_i32_0 : i32
    scf.if %2 {
      %cst_27 = arith.constant 0.000000e+00 : f32
      %62 = vector.broadcast %cst_27 : f32 to vector<1x1xf32>
      %c0_28 = arith.constant 0 : index
      %c0_29 = arith.constant 0 : index
      %63 = vector.load %arg6[%c0_28, %c0_29] : memref<1x1xf32, #tpu.memory_space<vmem>>, vector<1x1xf32>
      tpu.vector_store %arg6[%c0_28, %c0_29], %62 {strides = array<i32>} : memref<1x1xf32, #tpu.memory_space<vmem>>, vector<1x1xf32>,
    } else {
    }
    %c0 = arith.constant 0 : index
    %c0_1 = arith.constant 0 : index
    %3 = vector.load %arg2[%c0, %c0_1] : memref<8x128xf32, #tpu.memory_space<vmem>>, vector<8x128xf32>
    %c0_2 = arith.constant 0 : index
    %c0_3 = arith.constant 0 : index
    %4 = vector.load %arg3[%c0_2, %c0_3] : memref<128x384xf32, #tpu.memory_space<vmem>>, vector<128x384xf32>
    %cst = arith.constant dense<0.000000e+00> : vector<8x384xf32>
    %5 = tpu.matmul %3, %4, %cst {dimension_numbers = #tpu.dot_dimension_numbers<[1], [0], [0], [1], [0, 0, 1, 1], [], []>} : vector<8x128xf32>, vector<128x384xf32>, vector<8x384xf32> -> vector<8x384xf32>
    %6 = vector.extract_strided_slice %5 {offsets = [0, 0], sizes = [8, 128], strides = [1, 1]} : vector<8x384xf32> to vector<8x128xf32>
    %7 = vector.extract_strided_slice %5 {offsets = [0, 128], sizes = [8, 128], strides = [1, 1]} : vector<8x384xf32> to vector<8x128xf32>
    %8 = vector.extract_strided_slice %5 {offsets = [0, 256], sizes = [8, 128], strides = [1, 1]} : vector<8x384xf32> to vector<8x128xf32>
    %cst_4 = arith.constant dense<0.000000e+00> : vector<8xf32>
    %9 = vector.multi_reduction <add>, %8, %cst_4 [1] : vector<8x128xf32> to vector<8xf32>
    %10 = vector.shape_cast %9 : vector<8xf32> to vector<8x1xf32>
    %c0_5 = arith.constant 0 : index
    %c0_6 = arith.constant 0 : index
    %11 = vector.load %arg4[%c0_5, %c0_6] : memref<8x8xf32, #tpu.memory_space<vmem>>, vector<8x1xf32>
    %c0_7 = arith.constant 0 : index
    %c1 = arith.constant 1 : index
    %12 = vector.load %arg4[%c0_7, %c1] : memref<8x8xf32, #tpu.memory_space<vmem>>, vector<8x1xf32>
    %c0_8 = arith.constant 0 : index
    %c2 = arith.constant 2 : index
    %13 = vector.load %arg4[%c0_8, %c2] : memref<8x8xf32, #tpu.memory_space<vmem>>, vector<8x1xf32>
    %14 = math.absf %13 : vector<8x1xf32>
    %cst_9 = arith.constant 9.99999996E-13 : f32
    %15 = vector.broadcast %cst_9 : f32 to vector<8x1xf32>
    %16 = arith.cmpf olt, %14, %15 : vector<8x1xf32>
    %cst_10 = arith.constant 1.000000e+00 : f32
    %17 = vector.broadcast %cst_10 : f32 to vector<8x1xf32>
    %18 = arith.select %16, %17, %13 : vector<8x1xi1>, vector<8x1xf32>
    %cst_11 = arith.constant 5.000000e-01 : f32
    %19 = vector.broadcast %cst_11 : f32 to vector<8x1xf32>
    %20 = arith.mulf %19, %13 : vector<8x1xf32>
    %21 = math.tanh %20 : vector<8x1xf32>
    %cst_12 = arith.constant 5.000000e-01 : f32
    %22 = vector.broadcast %cst_12 : f32 to vector<8x1xf32>
    %23 = arith.mulf %22, %21 : vector<8x1xf32>
    %24 = tpu.reciprocal %18 {approx = true} : vector<8x1xf32> -> vector<8x1xf32>
    %25 = arith.mulf %23, %24 : vector<8x1xf32>
    %cst_13 = arith.constant 2.500000e-01 : f32
    %26 = vector.broadcast %cst_13 : f32 to vector<8x1xf32>
    %27 = arith.select %16, %26, %25 : vector<8x1xi1>, vector<8x1xf32>
    %cst_14 = arith.constant 5.000000e-01 : f32
    %28 = vector.broadcast %cst_14 : f32 to vector<8x1xf32>
    %29 = arith.mulf %28, %14 : vector<8x1xf32>
    %cst_15 = arith.constant 0.000000e+00 : f32
    %30 = vector.broadcast %cst_15 : f32 to vector<8x1xf32>
    %31 = arith.subf %30, %14 : vector<8x1xf32>
    %32 = math.exp %31 : vector<8x1xf32>
    %cst_16 = arith.constant 1.000000e+00 : f32
    %33 = vector.broadcast %cst_16 : f32 to vector<8x1xf32>
    %34 = arith.addf %33, %32 : vector<8x1xf32>
    %35 = math.log %34 : vector<8x1xf32>
    %36 = arith.addf %29, %35 : vector<8x1xf32>
    %cst_17 = arith.constant 0.693147182 : f32
    %37 = vector.broadcast %cst_17 : f32 to vector<8x1xf32>
    %38 = arith.subf %36, %37 : vector<8x1xf32>
    %39 = arith.addf %3, %7 : vector<8x128xf32>
    %40 = arith.mulf %39, %6 : vector<8x128xf32>
    %cst_18 = arith.constant dense<0.000000e+00> : vector<8xf32>
    %41 = vector.multi_reduction <add>, %40, %cst_18 [1] : vector<8x128xf32> to vector<8xf32>
    %42 = vector.shape_cast %41 : vector<8xf32> to vector<8x1xf32>
    %43 = arith.mulf %12, %10 : vector<8x1xf32>
    %44 = arith.subf %11, %42 : vector<8x1xf32>
    %45 = arith.mulf %10, %10 : vector<8x1xf32>
    %46 = arith.subf %44, %45 : vector<8x1xf32>
    %47 = arith.mulf %13, %13 : vector<8x1xf32>
    %48 = arith.subf %46, %47 : vector<8x1xf32>
    %49 = arith.mulf %27, %48 : vector<8x1xf32>
    %50 = arith.subf %43, %49 : vector<8x1xf32>
    %cst_19 = arith.constant 2.000000e+00 : f32
    %51 = vector.broadcast %cst_19 : f32 to vector<8x1xf32>
    %52 = arith.mulf %51, %38 : vector<8x1xf32>
    %53 = arith.subf %50, %52 : vector<8x1xf32>
    %c0_20 = arith.constant 0 : index
    %c0_21 = arith.constant 0 : index
    %54 = vector.load %arg6[%c0_20, %c0_21] : memref<1x1xf32, #tpu.memory_space<vmem>>, vector<1x1xf32>
    %cst_22 = arith.constant dense<0.000000e+00> : vector<1xf32>
    %55 = vector.multi_reduction <add>, %53, %cst_22 [0] : vector<8x1xf32> to vector<1xf32>
    %56 = vector.shape_cast %55 : vector<1xf32> to vector<1x1xf32>
    %57 = arith.addf %54, %56 : vector<1x1xf32>
    %c0_23 = arith.constant 0 : index
    %c0_24 = arith.constant 0 : index
    %58 = vector.load %arg6[%c0_23, %c0_24] : memref<1x1xf32, #tpu.memory_space<vmem>>, vector<1x1xf32>
    tpu.vector_store %arg6[%c0_23, %c0_24], %57 {strides = array<i32>} : memref<1x1xf32, #tpu.memory_space<vmem>>, vector<1x1xf32>,
    %c0_i32_25 = arith.constant 0 : i32
    %59 = arith.cmpi eq, %arg1, %c0_i32_25 : i32
    %60 = arith.extui %59 : i1 to i32
    %c0_i32_26 = arith.constant 0 : i32
    %61 = arith.cmpi ne, %60, %c0_i32_26 : i32
    scf.if %61 {
      %c0_27 = arith.constant 0 : index
      %c0_28 = arith.constant 0 : index
      %62 = vector.load %arg6[%c0_27, %c0_28] : memref<1x1xf32, #tpu.memory_space<vmem>>, vector<1x1xf32>
      %63 = vector.shape_cast %62 : vector<1x1xf32> to vector<1x1xf32>
      %64 = vector.broadcast %63 : vector<1x1xf32> to vector<8x128xf32>
      %c0_29 = arith.constant 0 : index
      %c0_30 = arith.constant 0 : index
      %65 = vector.load %arg5[%c0_29, %c0_30] : memref<8x128xf32, #tpu.memory_space<vmem>>, vector<8x128xf32>
      tpu.vector_store %arg5[%c0_29, %c0_30], %64 {strides = array<i32>} : memref<8x128xf32, #tpu.memory_space<vmem>>, vector<8x128xf32>,
    } else {
    }
    return
  }
  func.func @transform_0(%arg0: i32, %arg1: i32) -> (i32, i32) {
    %c1_i32 = arith.constant 1 : i32
    %0 = arith.muli %arg0, %c1_i32 : i32
    %1 = arith.addi %0, %arg1 : i32
    %c0_i32 = arith.constant 0 : i32
    %c0_i32_0 = arith.constant 0 : i32
    return %1, %c0_i32 : i32, i32
  }
  func.func @transform_1(%arg0: i32, %arg1: i32) -> (i32, i32) {
    %c0_i32 = arith.constant 0 : i32
    %c0_i32_0 = arith.constant 0 : i32
    %c0_i32_1 = arith.constant 0 : i32
    return %c0_i32, %c0_i32_0 : i32, i32
  }
  func.func @transform_2(%arg0: i32, %arg1: i32) -> (i32, i32) {
    %c1_i32 = arith.constant 1 : i32
    %0 = arith.muli %arg0, %c1_i32 : i32
    %1 = arith.addi %0, %arg1 : i32
    %c0_i32 = arith.constant 0 : i32
    %c0_i32_0 = arith.constant 0 : i32
    return %1, %c0_i32 : i32, i32
  }
  func.func @transform_3(%arg0: i32, %arg1: i32) -> (i32, i32) {
    %c0_i32 = arith.constant 0 : i32
    %c0_i32_0 = arith.constant 0 : i32
    return %arg0, %c0_i32 : i32, i32
  }
}

</mosaic_0001>

<bundles_post_ra>
// kernel: tpu_custom_call.1
= control target key start
LH: loop header
LB: loop body
LE: loop exit
PB: predicated region body
PF: predicated region fallthrough
CT: control target
= control target key end

     0   :  { %8 = vsyncpa [#allocation4], 0  ;;  %s1074_s0 = inlined_call_operand.vmem [shape: f32[16,128], index: 0, kind: input, shape index: {}]   ;;  %s1075_s1 = inlined_call_operand.hbm [shape: f32[128,384], index: 1, kind: input, shape index: {}]   ;;  %s1076_s2 = inlined_call_operand.vmem [shape: f32[16,8], index: 2, kind: input, shape index: {}]   ;;  %s1077_s3 = inlined_call_operand.hbm [shape: f32[16,128], index: 3, kind: output, shape index: {}]  }
   0x1   :  { %9 = vsyncpa [#allocation5], 0 }
   0x2   :  { %11 = vsyncpa [#allocation5 + $0x1], 0  ;;  %s912_s12 = smov 0   ;;  %s914_s13 = smov 0  }
   0x3   :  { %s916_s14 = smov 0   ;;  %s918_s15 = smov 0  }
   0x4   :  { %s920_s16 = smov 0   ;;  %s922_s17 = smov 0  }
   0x5 LB: > { %s620_s18 = sadd.s32 4294967295, %s879_s17   ;;  %s621_s19 = sadd.s32 4294967294, %s879_s17   ;;  %s879_s17 = sphi %s922_s17, %s17_s17   ;;  %s875_s16 = sphi %s920_s16, %s1086_s16   ;;  %s871_s15 = sphi %s918_s15, %s1085_s15   ;;  %s867_s14 = sphi %s916_s14, %s1084_s14   ;;  %s863_s13 = sphi %s914_s13, %s1083_s13   ;;  %s859_s12 = sphi %s912_s12, %s1082_s12  }
   0x6   : > { %s29_s20 = sadd.s32 1, %s875_s16  ;;  %s113_s21 = sadd.s32 1, %s867_s14 }
   0x7   : > { %p31_p0 = scmp.ge.s32.totalorder %s29_s20, 2  ;;  %p123_p1 = scmp.ne.s32.totalorder %s867_s14, %s863_s13 }
   0x8   : > { %p124_p2 = scmp.eq.s32.totalorder %s620_s18, 1  ;;  %p129_p3 = scmp.ne.s32.totalorder %s863_s13, %s859_s12 }
   0x9   : > { %s1088_s20 = smov (%p31_p0, %s29_s20), 0  ;;  %p130_p5 = scmp.eq.s32.totalorder %s621_s19, 1 }
   0xa   : > { %p952_p4 = por %p124_p2, %p123_p1  ;;  %s110_s23 = ssub.s32 %s875_s16, %s1088_s20 }
   0xb   : > { %p622_p6 = scmp.ge.s32.totalorder %s879_s17, 1  ;;  %p111_p7 = scmp.eq.s32.totalorder %s110_s23, 0 }
   0xc   : > { %p959_p8 = por %p130_p5, %p129_p3  ;;  %p137_p9 = scmp.lt.s32.totalorder %s879_s17, 3 }
   0xd   : > { %s965_s25 = scalar_select %p111_p7, %s867_s14, %s113_s21  }
   0xe   : > { %p967_p10 = pnand %p622_p6, %p137_p9  ;;  %p971_p11 = scmp.eq.s32.totalorder %s620_s18, 0 }
   0xf   : > { %s881_s28 = smov [#allocation3]  }
  0x10   : > { %p694_p12 = pneg %p967_p10  ;;  %s149_s29 = sshll.u32 %s881_s28, 4  ;;  %s150_s29 = int_to_ptr.vmem [resolvable:$true] %s149_s29 }
  0x11   : > { %s784_s30 = scalar_lea.vmem %s150_s29, 6144  ;;  %p792_p5 = scmp.lt.s32.totalorder %s150_s29, %s150_s29 }
  0x12   : > { %p695_p13 = pnand %p971_p11, %p694_p12  ;;  %p785_p1 = scmp.ne.s32.totalorder %s150_s29, %s784_s30 }
  0x13   : > { %p793_p6 = scmp.lt.s32.totalorder %s784_s30, %s784_s30 }
  0x14   : > { %p775_p0 = pneg %p695_p13 }
  0x15   : > { %p794_p7 = por %p793_p6, %p792_p5 }
  0x16   : > { %p787_p2 = pnand %p785_p1, %p775_p0 }
  0x18   : > { %p788_p3 = pneg %p787_p2 }
  0x1a   : > { %p795_p9 = pnand %p794_p7, %p788_p3 }
  0x1c   : > { %798 = shalt.err (!%p795_p9)
}
  0x1d   : > { %s882_s4 = smov 384   ;;  %s883_s5 = smov 24  }
  0x1e   : > { %697 = dma.hbm_to_vmem [thread:$0]  (!%p695_p13), %s1075_s1, 6144, %s150_s29, [#allocation4], %s882_s4, %s882_s4, %s883_s5  }
  0x1f   : > { %183 = sbr.rel (%p967_p10) target bundleno = 929 (0x3a1), region = 32 }
  0x24   : > { %850 = dma.done.wait (%p971_p11), [#allocation4], 6144  }
  0x25   : > { %852 = vsyncadd (%p971_p11), [#allocation4], 4294961152  ;;  %v884_v0 = vmov 0.0   ;;  %vm885_vm0 = vmmov 0   ;;  %v277_v1 = vld [vmem:[#allocation3 + $0x170] sm:$0xff]  ;;  %v276_v2 = vld [vmem:[#allocation3 + $0x168] sm:$0xff] }
  0x26   : > { %653 = vmatprep.subr.mxu1 %v884_v0  ;;  %343 = vmatprep.mubr.f32.mxu0 %v884_v0  ;;  %v278_v3 = vld [vmem:[#allocation3 + $0x178] sm:$0xff]  ;;  %v273_v5 = vld [vmem:[#allocation3 + $0x150] sm:$0xff]  ;;  %v275_v6 = vld [vmem:[#allocation3 + $0x160] sm:$0xff]  ;;  %p213_p10 = scmp.lt.s32.totalorder %s871_s15, 1  ;;  %s886_s26 = smov 126   ;;  %vm228_vm2 = vcmask 0  }
  0x27   : > { %685 = vmatprep.mubr.msk.f32.mxu1 %vm885_vm0, %v884_v0  ;;  %279 = vmatprep.subr.mxu0 %v277_v1  ;;  %v274_v4 = vld [vmem:[#allocation3 + $0x158] sm:$0xff]  ;;  %v271_v7 = vld [vmem:[#allocation3 + $0x140] sm:$0xff]  ;;  %v272_v8 = vld [vmem:[#allocation3 + $0x148] sm:$0xff]  ;;  %s887_s27 = smov 2   ;;  %s888_s28 = smov 127   ;;  %vm472_vm3 = vcmask 15368  }
  0x28   : > { %654 = vmatpush3.msra.mxu1 %v278_v3  ;;  %280 = vmatpush1.msra.mxu0 %v276_v2  ;;  %v270_v9 = vld [vmem:[#allocation3 + $0x138] sm:$0xff]  ;;  %v268_v10 = vld [vmem:[#allocation3 + $0x128] sm:$0xff]  ;;  %v269_v11 = vld [vmem:[#allocation3 + $0x130] sm:$0xff]  ;;  %s1004_s8 = scalar_select %p213_p10, %s871_s15, 1  ;;  %229 = vst.msk [vmem:[#allocation2] sm:$0x1] %vm228_vm2, %v884_v0 }
  0x29   : > { %655 = vmatprep.subr.mxu1 %v884_v0  ;;  %281 = vmatprep.subr.mxu0 %v274_v4  ;;  %v267_v12 = vld [vmem:[#allocation3 + $0x120] sm:$0xff]  ;;  %v265_v13 = vld [vmem:[#allocation3 + $0x110] sm:$0xff]  ;;  %v266_v14 = vld [vmem:[#allocation3 + $0x118] sm:$0xff]  ;;  %s209_s29 = sand.u32 1, %s863_s13   ;;  %s633_s6 = sshll.u32 %s871_s15, 7 }
  0x2a   : > { %656 = vmatpush3.msra.mxu1 %v275_v6  ;;  %282 = vmatpush1.msra.mxu0 %v273_v5  ;;  %v264_v15 = vld [vmem:[#allocation3 + $0x108] sm:$0xff]  ;;  %v262_v16 = vld [vmem:[#allocation3 + $0xf8] sm:$0xff]  ;;  %v263_v17 = vld [vmem:[#allocation3 + $0x100] sm:$0xff]  ;;  %s628_s9 = sshll.u32 %s1004_s8, 3  ;;  %s627_s30 = sshll.u32 %s209_s29, 3 }
  0x2b   : > { %657 = vmatprep.subr.mxu1 %v884_v0  ;;  %283 = vmatprep.subr.mxu0 %v271_v7  ;;  %v261_v18 = vld [vmem:[#allocation3 + $0xf0] sm:$0xff]  ;;  %v259_v19 = vld [vmem:[#allocation3 + $0xe0] sm:$0xff]  ;;  %v260_v20 = vld [vmem:[#allocation3 + $0xe8] sm:$0xff]  ;;  %s216_s18 = scalar_lea.vmem %s1074_s0, %s628_s9  ;;  %s222_s23 = scalar_lea.vmem %s1076_s2, %s628_s9 }
  0x2c   : > { %658 = vmatpush3.msra.mxu1 %v272_v8  ;;  %284 = vmatpush1.msra.mxu0 %v270_v9  ;;  %v258_v21 = vld [vmem:[#allocation3 + $0xd8] sm:$0xff]  ;;  %v256_v22 = vld [vmem:[#allocation3 + $0xc8] sm:$0xff]  ;;  %v257_v23 = vld [vmem:[#allocation3 + $0xd0] sm:$0xff]  ;;  %s211_s4 = scalar_lea.vmem [#allocation6], %s627_s30  ;;  %s527_s9 = scalar_lea.hbm %s1077_s3, %s633_s6 }
  0x2d   : > { %659 = vmatprep.subr.mxu1 %v884_v0  ;;  %285 = vmatprep.subr.mxu0 %v268_v10  ;;  %v255_v24 = vld [vmem:[#allocation3 + $0xc0] sm:$0xff]  ;;  %v253_v25 = vld [vmem:[#allocation3 + $0xb0] sm:$0xff]  ;;  %v254_v26 = vld [vmem:[#allocation3 + $0xb8] sm:$0xff]  ;;  %s529_s5 = sshll.u32 %s211_s4, 4  ;;  %s516_s10 = scalar_lea.sflag [#allocation5], %s209_s29  ;;  %s1031_s5 = int_to_ptr.vmem [resolvable:$true] %s529_s5 }
  0x2e   : > { %660 = vmatpush3.msra.mxu1 %v269_v11  ;;  %286 = vmatpush1.msra.mxu0 %v267_v12  ;;  %v252_v27 = vld [vmem:[#allocation3 + $0xa8] sm:$0xff]  ;;  %v250_v28 = vld [vmem:[#allocation3 + $0x98] sm:$0xff]  ;;  %v251_v29 = vld [vmem:[#allocation3 + $0xa0] sm:$0xff]  ;;  %s799_s11 = scalar_lea.vmem %s1031_s5, 128 }
  0x2f   : > { %661 = vmatprep.subr.mxu1 %v884_v0  ;;  %287 = vmatprep.subr.mxu0 %v265_v13  ;;  %v249_v30 = vld [vmem:[#allocation3 + $0x90] sm:$0xff]  ;;  %v247_v31 = vld [vmem:[#allocation3 + $0x80] sm:$0xff]  ;;  %v248_v32 = vld [vmem:[#allocation3 + $0x88] sm:$0xff]  ;;  %p800_p11 = scmp.ne.s32.totalorder %s1031_s5, %s799_s11 }
  0x30   : > { %662 = vmatpush3.msra.mxu1 %v266_v14  ;;  %288 = vmatpush1.msra.mxu0 %v264_v15  ;;  %v246_v33 = vld [vmem:[#allocation3 + $0x78] sm:$0xff]  ;;  %v244_v34 = vld [vmem:[#allocation3 + $0x68] sm:$0xff]  ;;  %v245_v35 = vld [vmem:[#allocation3 + $0x70] sm:$0xff] }
  0x31   : > { %663 = vmatprep.subr.mxu1 %v884_v0  ;;  %289 = vmatprep.subr.mxu0 %v262_v16  ;;  %v243_v36 = vld [vmem:[#allocation3 + $0x60] sm:$0xff]  ;;  %v241_v37 = vld [vmem:[#allocation3 + $0x50] sm:$0xff]  ;;  %v242_v38 = vld [vmem:[#allocation3 + $0x58] sm:$0xff]  ;;  %p801_p12 = pnand %p800_p11, %p952_p4 }
  0x32   : > { %664 = vmatpush3.msra.mxu1 %v263_v17  ;;  %290 = vmatpush1.msra.mxu0 %v261_v18  ;;  %v240_v39 = vld [vmem:[#allocation3 + $0x48] sm:$0xff]  ;;  %v238_v40 = vld [vmem:[#allocation3 + $0x38] sm:$0xff]  ;;  %v239_v41 = vld [vmem:[#allocation3 + $0x40] sm:$0xff] }
  0x33   : > { %665 = vmatprep.subr.mxu1 %v884_v0  ;;  %291 = vmatprep.subr.mxu0 %v259_v19  ;;  %v237_v42 = vld [vmem:[#allocation3 + $0x30] sm:$0xff]  ;;  %v235_v43 = vld [vmem:[#allocation3 + $0x20] sm:$0xff]  ;;  %v236_v44 = vld [vmem:[#allocation3 + $0x28] sm:$0xff]  ;;  %p802_p13 = pneg %p801_p12 }
  0x34   : > { %666 = vmatpush3.msra.mxu1 %v260_v20  ;;  %292 = vmatpush1.msra.mxu0 %v258_v21  ;;  %v234_v45 = vld [vmem:[#allocation3 + $0x18] sm:$0xff]  ;;  %v232_v46 = vld [vmem:[#allocation3 + $0x8] sm:$0xff]  ;;  %v233_v47 = vld [vmem:[#allocation3 + $0x10] sm:$0xff] }
  0x35   : > { %667 = vmatprep.subr.mxu1 %v884_v0  ;;  %293 = vmatprep.subr.mxu0 %v256_v22  ;;  %v231_v48 = vld [vmem:[#allocation3] sm:$0xff] }
  0x36   : > { %668 = vmatpush3.msra.mxu1 %v257_v23  ;;  %294 = vmatpush1.msra.mxu0 %v255_v24  ;;  %v230_v49 = vld [vmem:[%s216_s18] sm:$0xff]  ;;  %s891_s18 = smov [#allocation6]  }
  0x37   : > { %669 = vmatprep.subr.mxu1 %v884_v0  ;;  %295 = vmatprep.subr.mxu0 %v253_v25  ;;  %v422_v50 = vld [vmem:[%s222_s23] sm:$0xff]  ;;  %s803_s19 = sshll.u32 %s891_s18, 4  ;;  %s804_s19 = int_to_ptr.vmem [resolvable:$false] %s803_s19 }
  0x38   : > { %670 = vmatpush3.msra.mxu1 %v254_v26  ;;  %296 = vmatpush1.msra.mxu0 %v252_v27  ;;  %v449_v51 = vmul.f32 %v422_v50, %v422_v50  ;;  %v423_v58 = vand.u32 2147483647, %v422_v50  ;;  %v426_v13 = vmul.f32 0.5, %v422_v50  ;;  %s805_s15 = scalar_lea.vmem %s804_s19, 256  ;;  %p806_p0 = scmp.lt.s32.totalorder %s1031_s5, %s804_s19 }
  0x39   : > { %671 = vmatprep.subr.mxu1 %v884_v0  ;;  %297 = vmatprep.subr.mxu0 %v250_v28  ;;  %p807_p1 = scmp.lt.s32.totalorder %s805_s15, %s799_s11 }
  0x3a   : > { %672 = vmatpush3.msra.mxu1 %v251_v29  ;;  %298 = vmatpush1.msra.mxu0 %v249_v30  ;;  %v433_v59 = vsub.f32 0.0, %v423_v58  ;;  %v432_v2 = vmul.f32 0.5, %v423_v58  ;;  %vm424_vm1 = vcmp.lt.f32.partialorder %v423_v58, 1e-12  ;;  %v889_v29 = vmov 1966171168  }
  0x3b   : > { %673 = vmatprep.subr.mxu1 %v884_v0  ;;  %299 = vmatprep.subr.mxu0 %v247_v31  ;;  %v425_v14 = vsel %vm424_vm1, 1.0, %v422_v50  ;;  %v482_v30 = vunpack.c.l.s4 %v889_v29  ;;  %v484_v31 = vlaneseq  ;;  %p808_p2 = por %p807_p1, %p806_p0 }
  0x3c   : > { %674 = vmatpush3.msra.mxu1 %v248_v32  ;;  %300 = vmatpush1.msra.mxu0 %v246_v33  ;;  %v434_v60 = vmul.f32 1.442695, %v433_v59 }
  0x3d   : > { %675 = vmatprep.subr.mxu1 %v884_v0  ;;  %301 = vmatprep.subr.mxu0 %v244_v34  ;;  %v483_v34 = vunpack.c.0.s8 %v482_v30  ;;  %p809_p3 = pnand %p808_p2, %p802_p13 }
  0x3e   : > { %676 = vmatpush3.msra.mxu1 %v245_v35  ;;  %302 = vmatpush1.msra.mxu0 %v243_v36  ;;  %765 = vpow2.f32 %v434_v60  ;;  %v485_v35 = vshrl.u32 %v484_v31, 7 }
  0x3f   : > { %677 = vmatprep.subr.mxu1 %v884_v0  ;;  %303 = vmatprep.subr.mxu0 %v241_v37  ;;  %v890_v37 = vmov 0  }
  0x40   : > { %678 = vmatpush3.msra.mxu1 %v242_v38  ;;  %304 = vmatpush1.msra.mxu0 %v240_v39  ;;  %v486_v38 = vsub.s32 %v483_v34, %v485_v35 }
  0x41   : > { %679 = vmatprep.subr.mxu1 %v884_v0  ;;  %305 = vmatprep.subr.mxu0 %v238_v40 }
  0x42   : > { %680 = vmatpush3.msra.mxu1 %v239_v41  ;;  %306 = vmatpush1.msra.mxu0 %v237_v42  ;;  %v471_v42 = vld [vmem:[#allocation2] sm:$0x1] }
  0x43   : > { %681 = vmatprep.subr.mxu1 %v884_v0  ;;  %307 = vmatprep.subr.mxu0 %v235_v43 }
  0x44   : > { %682 = vmatpush3.msra.mxu1 %v236_v44  ;;  %308 = vmatpush1.msra.mxu0 %v234_v45 }
  0x45   : > { %683 = vmatprep.subr.mxu1 %v884_v0  ;;  %309 = vmatprep.subr.mxu0 %v232_v46 }
  0x46   : > { %684 = vmatpush3.msra.mxu1 %v233_v47  ;;  %310 = vmatpush1.msra.mxu0 %v231_v48 }
  0x47   : > { %686 = vmatmul.mubr.f32.vlgmr.msra.gmra.mxu1 %v230_v49  ;;  %344 = vmatmul.mubr.f32.vlgmr.msra.gmra.mxu0 %v230_v49 }
  0x48   : > { %451 = vrot.lane.b32.xlu1 %v449_v51, %s886_s26  ;;  %764 = vset.pattern.permute.xlu0 %v890_v37 }
  0x49   : > { %763 = vset.pattern.permute.xlu1 %v890_v37 }
  0x4b   : > { %v766_v61 = vpop.eup %765 }
  0x4c   : > { %v436_v62 = vadd.f32 1.0, %v766_v61 }
  0x4e   : > { %767 = vlog2.f32 %v436_v62 }
  0x4f   : > { %769 = vtanh.f32 %v426_v13 }
  0x50   : > { %771 = vrcp.f32 %v425_v14 }
  0x5b   : > { %v768_v63 = vpop.eup %767 }
  0x5c   : > { %v438_v3 = vmul.f32 0.6931472, %v768_v63  ;;  %v770_v15 = vpop.eup %769 }
  0x5d   : > { %v428_v16 = vmul.f32 0.5, %v770_v15  ;;  %v772_v17 = vpop.eup %771 }
  0x5e   : > { %v439_v4 = vadd.f32 %v438_v3, %v432_v2 }
  0x5f   : > { %v430_v18 = vmul.f32 %v772_v17, %v428_v16 }
  0x60   : > { %v630_v10 = vadd.f32 -0.6931472, %v439_v4 }
  0x61   : > { %v431_v19 = vsel %vm424_vm1, 0.25, %v430_v18 }
  0x62   : > { %v465_v12 = vmul.f32 2.0, %v630_v10 }
  0xba   : > { %v452_v8 = vpop.permute.xlu1 %451 }
 0x107   : > { %v416_v52 = vpop.f32.mrf.mxu1  ;;  %v345_v53 = vpop.f32.mrf.mxu0 }
 0x108   : > { %420 = vadd.xlane.f32.xlu0 %v416_v52 }
 0x109   : > { %v687_v54 = vpop.f32.mrf.mxu1  ;;  %v347_v55 = vpop.f32.mrf.mxu0 }
 0x10a   : > { %v441_v56 = vadd.f32 %v347_v55, %v230_v49 }
 0x10c   : > { %v442_v57 = vmul.f32 %v441_v56, %v345_v53 }
 0x10e   : > { %443 = vadd.xlane.f32.xlu0 %v442_v57 }
 0x191   : > { %v421_v1 = vpop.xlane.xlu0 %420 }
 0x192   : > { %v447_v6 = vmul.f32 %v421_v1, %v421_v1  ;;  %v445_v22 = vmul.f32 %v422_v50, %v421_v1 }
 0x197   : > { %v444_v5 = vpop.xlane.xlu0 %443 }
 0x198   : > { %v446_v7 = vsub.f32 %v422_v50, %v444_v5 }
 0x19a   : > { %v448_v9 = vsub.f32 %v446_v7, %v447_v6 }
 0x19c   : > { %v454_v11 = vsub.f32 %v448_v9, %v452_v8 }
 0x19e   : > { %456 = vrot.lane.b32.xlu1 %v454_v11, %s887_s27 }
 0x1a2   : > { %467 = vrot.lane.b32.xlu1 %v465_v12, %s888_s28 }
 0x210   : > { %v457_v20 = vpop.permute.xlu1 %456 }
 0x211   : > { %v459_v21 = vmul.f32 %v457_v20, %v431_v19 }
 0x213   : > { %461 = vrot.lane.b32.xlu0 %v459_v21, %s888_s28 }
 0x214   : > { %v468_v24 = vpop.permute.xlu1 %467 }
 0x285   : > { %v462_v23 = vpop.permute.xlu0 %461 }
 0x286   : > { %v464_v25 = vsub.f32 %v445_v22, %v462_v23 }
 0x288   : > { %v470_v26 = vsub.f32 %v464_v25, %v468_v24 }
 0x28a   : > { %v473_v27 = vsel %vm472_vm3, %v470_v26, 0.0 }
 0x28b   : > { %v474_v28 = vrot.slane %v473_v27, 4 }
 0x28d   : > { %v475_v32 = vadd.f32 %v474_v28, %v473_v27 }
 0x28f   : > { %v476_v33 = vrot.slane %v475_v32, 2 }
 0x291   : > { %v477_v36 = vadd.f32 %v476_v33, %v475_v32 }
 0x293   : > { %v478_v0 = vrot.slane %v477_v36, 1 }
 0x295   : > { %v479_v39 = vadd.f32 %v478_v0, %v477_v36 }
 0x297   : > { %v487_v40 = vrot.slane %v479_v39, %v486_v38 }
 0x299   : > { %v494_v41 = vrot.slane %v487_v40, %v486_v38 }
 0x29b   : > { %495 = vrot.lane.b32.xlu1 %v494_v41, %s888_s28 }
 0x30d   : > { %v496_v43 = vpop.permute.xlu1 %495 }
 0x30e   : > { %v498_v44 = vadd.f32 %v496_v43, %v471_v42 }
 0x310   : > { %500 = vst.msk [vmem:[#allocation2] sm:$0x1] %vm228_vm2, %v498_v44 }
 0x317   : > { %v631_v45 = vld [vmem:[#allocation2] ss:$0 sm:$0xff] }
 0x318   : > { %511 = vperm.xlu1 %763, %v631_v45  }
 0x393   : > { %v512_v46 = vpop.permute.xlu1 %511 }
 0x394   : > { %514 = vst [vmem:[%s211_s4] sm:$0xff] %v512_v46 }
 0x395   : > { %812 = shalt.err (!%p809_p3)
}
 0x396   : > { %s813_s21 = scalar_lea.hbm %s527_s9, 128  ;;  %s817_s27 = scalar_lea.hbm %s1077_s3, 256 }
 0x397   : > { %p814_p5 = scmp.ne.s32.totalorder %s527_s9, %s813_s21  ;;  %p818_p9 = scmp.lt.s32.totalorder %s527_s9, %s1077_s3 }
 0x398   : > { %p819_p10 = scmp.lt.s32.totalorder %s817_s27, %s813_s21 }
 0x399   : > { %p815_p6 = pnand %p814_p5, %p952_p4 }
 0x39a   : > { %p820_p11 = por %p819_p10, %p818_p9 }
 0x39b   : > { %p816_p7 = pneg %p815_p6 }
 0x39d   : > { %p821_p12 = pnand %p820_p11, %p816_p7 }
 0x39f   : > { %824 = shalt.err (!%p821_p12)
}
 0x3a0   : > { %692 = dma.vmem_to_hbm [thread:$0]  (%p952_p4), %s1031_s5, 128, %s527_s9, %s516_s10  }
 0x3a1 PF: > { %p704_p13 = scmp.ge.s32.totalorder %s879_s17, 2  ;;  %s541_s30 = sand.u32 1, %s859_s12  }
 0x3a2   : > { %s542_s4 = scalar_lea.sflag [#allocation5], %s541_s30 }
 0x3a3   : > { %p699_p0 = pnand %p704_p13, %p959_p8 }
 0x3a5   : > { %p700_p1 = pneg %p699_p0 }
 0x3a7   : > { %854 = dma.done.wait (%p700_p1), %s542_s4, 128  }
 0x3a8   : > { %856 = vsyncadd (%p700_p1), %s542_s4, 4294967168  ;;  %s17_s17 = sadd.s32 1, %s879_s17   ;;  %s1082_s12 = smov %s863_s13 }
 0x3a9   : > { %p14_p2 = scmp.ge.s32.totalorder %s17_s17, 4   ;;  %s1083_s13 = smov %s867_s14 }
 0x3aa   : > { %s1084_s14 = smov %s965_s25  ;;  %s1085_s15 = smov %s875_s16 }
 0x3ab   : > { %s1086_s16 = smov %s1088_s20  ;;  %16 = sbr.rel (!%p14_p2) target bundleno = 5 (0x5), region = 83 }
 0x3b0   :  { %547 = vsyncpa [#allocation4], 1 }
 0x3b1   :  { %549 = vsyncpa [#allocation4 + $0x1], 1 }
 0x3b2   :  { %550 = vsyncpa [#allocation5], 1 }
 0x3b3   :  { %552 = vsyncpa [#allocation5 + $0x1], 1 }

</bundles_post_ra>
